<compile_context>
chip_gen: v7x
topology: tpu7x:2x2x1
jax: 0.10.0
libtpu: 0.0.40
codegen_flags: <defaults>
</compile_context>

<pallas_src>
import jax
import jax.numpy as jnp
from jax.experimental import pallas as pl
from jax.experimental.pallas import tpu as pltpu

_MAX_TILE_N = 4096     # rows/tile cap: big DMAs, still << v5e 16 MiB scoped VMEM
_MIN_GRID_STEPS = 4    # keep >=4 grid steps so v7x's 2 TCs both get work
_SMALL_N_MAX = 1024    # below this, single whole-array invocation is safe on all gens


def _round_up(v, m):
    return ((v + m - 1) // m) * m


def _linear_kernel(x_ref, wt_ref, b_ref, o_ref):
    # MXU matmul with f32 accumulation, VPU bias add; compact (tile_n, out) store.
    acc = jnp.dot(x_ref[...], wt_ref[...], preferred_element_type=jnp.float32)
    acc = acc + b_ref[...]
    o_ref[...] = acc.astype(o_ref.dtype)


def prepare_params(weight, bias):
    """One-time ("init-time") param prep: transpose PyTorch (out, in) weight to
    (in, out).  No lane padding -- the kernel emits a compact output."""
    wt = jnp.asarray(weight).T               # (in, out)
    b = jnp.asarray(bias).reshape(1, -1)     # (1, out)
    return wt, b


def _linear_single(x, wt, b):
    """Small-N path: one invocation, whole-array VMEM blocks, no grid."""
    n = x.shape[0]
    out_f = wt.shape[1]
    vmem = pl.BlockSpec(memory_space=pltpu.MemorySpace.VMEM)
    return pl.pallas_call(
        _linear_kernel,
        out_shape=jax.ShapeDtypeStruct((n, out_f), x.dtype),
        in_specs=[vmem, vmem, vmem],
        out_specs=vmem,
    )(x, wt, b)


def _linear_tiled(x, wt, b, tile_n):
    """Large-N path: tile only the batch axis (already padded to a tile
    multiple); weight/bias stay whole-array resident; batch axis 'parallel'
    so v7x's 2 TensorCores shard it."""
    n, in_f = x.shape
    out_f = wt.shape[1]
    itemsize = jnp.dtype(x.dtype).itemsize
    cost = pl.CostEstimate(
        flops=2 * n * in_f * out_f,
        transcendentals=0,
        bytes_accessed=(n * in_f + in_f * out_f + out_f + n * out_f) * itemsize,
    )
    return pl.pallas_call(
        _linear_kernel,
        out_shape=jax.ShapeDtypeStruct((n, out_f), x.dtype),
        grid=(n // tile_n,),
        in_specs=[
            pl.BlockSpec((tile_n, in_f), lambda i: (i, 0)),
            pl.BlockSpec((in_f, out_f), lambda i: (0, 0)),
            pl.BlockSpec((1, out_f), lambda i: (0, 0)),
        ],
        out_specs=pl.BlockSpec((tile_n, out_f), lambda i: (i, 0)),
        compiler_params=pltpu.CompilerParams(
            dimension_semantics=("parallel",)),
        cost_estimate=cost,
    )(x, wt, b)


def _select_tile(n):
    # Largest tile <= _MAX_TILE_N that still leaves >= _MIN_GRID_STEPS steps.
    tile = min(_MAX_TILE_N, _round_up(-(-n // _MIN_GRID_STEPS), 8))
    return max(tile, 8)


def customer_linear2(x, wt, b):
    """Forward of CustomerLinear2. x: (N, in); wt/b from prepare_params."""
    n = x.shape[0]
    if n <= _SMALL_N_MAX:
        # TODO(synk): at tiny shapes this is launch-overhead bound; in a model,
        # fuse into the surrounding kernel instead of a standalone pallas_call.
        return _linear_single(x, wt, b)
    tile_n = _select_tile(n)
    n_pad = _round_up(n, tile_n)
    x_p = jnp.pad(x, ((0, n_pad - n), (0, 0))) if n_pad != n else x
    y = _linear_tiled(x_p, wt, b, tile_n)
    return y[:n] if n_pad != n else y


if __name__ == "__main__":
    input_size, output_size, batch = 10, 5, 16

    key = jax.random.PRNGKey(0)
    kx, kw, kb = jax.random.split(key, 3)

    # Input like torch.randn(16, 10)
    x = jax.random.normal(kx, (batch, input_size), dtype=jnp.float32)

    # PyTorch-style nn.Linear init: U(-1/sqrt(in), 1/sqrt(in))
    bound = 1.0 / float(input_size) ** 0.5
    weight = jax.random.uniform(kw, (output_size, input_size),
                                minval=-bound, maxval=bound, dtype=jnp.float32)
    bias = jax.random.uniform(kb, (output_size,),
                              minval=-bound, maxval=bound, dtype=jnp.float32)

    # One-time parameter prep (transpose only) -- the "init" step.
    wt, b = prepare_params(weight, bias)

    # Small-N path (the module's literal shape).
    y = customer_linear2(x, wt, b)
    jax.block_until_ready(y)
    y_ref = x @ weight.T + bias
    assert y.shape == (batch, output_size)
    assert jnp.allclose(y, y_ref, atol=1e-5, rtol=1e-5)

    # Tiled ragged-N path sanity check (exercises grid + row padding + slice).
    n_big = 10000  # not a multiple of the tile -> padded to a tile multiple
    xb = jax.random.normal(kx, (n_big, input_size), dtype=jnp.float32)
    yb = customer_linear2(xb, wt, b)
    jax.block_until_ready(yb)
    yb_ref = xb @ weight.T + bias
    assert yb.shape == (n_big, output_size)
    assert jnp.allclose(yb, yb_ref, atol=1e-4, rtol=1e-4)

    print("KERNEL_OK")
</pallas_src>

<mosaic_0001>
module attributes {stable_mosaic.version = 11 : i64} {
  func.func @_linear_kernel(%arg0: memref<16x10xf32, #tpu.memory_space<vmem>>, %arg1: memref<10x5xf32, #tpu.memory_space<vmem>>, %arg2: memref<1x5xf32, #tpu.memory_space<vmem>>, %arg3: memref<16x5xf32, #tpu.memory_space<vmem>>) attributes {dimension_semantics = [], scalar_prefetch = 0 : i64, scratch_operands = 0 : i64, tpu.core_type = #tpu.core_type<tc>} {
    %c0 = arith.constant 0 : index
    %c0_0 = arith.constant 0 : index
    %0 = vector.load %arg0[%c0, %c0_0] : memref<16x10xf32, #tpu.memory_space<vmem>>, vector<16x10xf32>
    %c0_1 = arith.constant 0 : index
    %c0_2 = arith.constant 0 : index
    %1 = vector.load %arg1[%c0_1, %c0_2] : memref<10x5xf32, #tpu.memory_space<vmem>>, vector<10x5xf32>
    %cst = arith.constant dense<0.000000e+00> : vector<16x5xf32>
    %2 = tpu.matmul %0, %1, %cst {dimension_numbers = #tpu.dot_dimension_numbers<[1], [0], [0], [1], [0, 0, 1, 1], [], []>} : vector<16x10xf32>, vector<10x5xf32>, vector<16x5xf32> -> vector<16x5xf32>
    %c0_3 = arith.constant 0 : index
    %c0_4 = arith.constant 0 : index
    %3 = vector.load %arg2[%c0_3, %c0_4] : memref<1x5xf32, #tpu.memory_space<vmem>>, vector<1x5xf32>
    %4 = vector.broadcast %3 : vector<1x5xf32> to vector<16x5xf32>
    %5 = arith.addf %2, %4 : vector<16x5xf32>
    %c0_5 = arith.constant 0 : index
    %c0_6 = arith.constant 0 : index
    %6 = vector.load %arg3[%c0_5, %c0_6] : memref<16x5xf32, #tpu.memory_space<vmem>>, vector<16x5xf32>
    tpu.vector_store %arg3[%c0_5, %c0_6], %5 {strides = array<i32>} : memref<16x5xf32, #tpu.memory_space<vmem>>, vector<16x5xf32>,
    return
  }
}

</mosaic_0001>

<bundles_post_ra>
// kernel: tpu_custom_call.1
= control target key start
LH: loop header
LB: loop body
LE: loop exit
PB: predicated region body
PF: predicated region fallthrough
CT: control target
= control target key end

     0   :  { %vm32_vm0 = vcmask 1041408   ;;  %vm25_vm1 = vcmask 80896   ;;  %vm140_vm2 = vmmov 1   ;;  %vm111_vm4 = vcmask 39936   ;;  %s182_s1 = inlined_call_operand.vmem [shape: f32[10,5], index: 1, kind: input, shape index: {}]   ;;  %s183_s0 = inlined_call_operand.vmem [shape: f32[16,10], index: 0, kind: input, shape index: {}]   ;;  %s184_s2 = inlined_call_operand.vmem [shape: f32[1,5], index: 2, kind: input, shape index: {}]   ;;  %s185_s3 = inlined_call_operand.vmem [shape: f32[16,5], index: 3, kind: output, shape index: {}]  }
   0x1   :  { %v16_v0 = vld [vmem:[%s182_s1] sm:$0xff]  ;;  %v17_v1 = vld [vmem:[%s182_s1 + $0x8] sm:$0x3]  ;;  %vm134_vm3 = vmpackc.low %vm32_vm0, %vm140_vm2 }
   0x2   :  { %v133_v2 = vpack.c.bf16 %v17_v1, %v16_v0  ;;  %v14_v3 = vld [vmem:[%s183_s0] sm:$0xff]  ;;  %v15_v4 = vld [vmem:[%s183_s0 + $0x8] sm:$0xff] }
   0x3   :  { %130 = vmatprep.mubr.msk.f32.mxu0 %vm25_vm1, %v14_v3  ;;  %v118_v5 = vld [vmem:[%s184_s2] ss:$0 sm:$0xff] }
   0x4   :  { %135 = vmatprep.subr.msk.bf16.mxu0 %vm134_vm3, %v133_v2 }
   0x5   :  { %138 = vmatpush3.bf16.msk.msra.mxu0 %vm134_vm3, %v133_v2 }
   0x8   :  { %131 = vmatmul.mubr.msk.f32.vlgmr.msra.gmra.mrb[0].mxu0 %vm25_vm1, %v15_v4 }
  0xdb   :  { %v132_v6 = vpop.f32.mrb[0].mxu0 }
  0xdc   :  { %v108_v7 = vadd.f32 %v132_v6, %v118_v5  ;;  %v102_v8 = vpop.f32.mrb[1].mxu0 }
  0xdd   :  { %v103_v9 = vadd.f32 %v118_v5, %v102_v8 }
  0xde   :  { %113 = vst.msk [vmem:[%s185_s3 + $0x8] sm:$0xff] %vm111_vm4, %v108_v7 }
  0xdf   :  { %112 = vst.msk [vmem:[%s185_s3] sm:$0xff] %vm111_vm4, %v103_v9 }

</bundles_post_ra>
